<compile_context>
chip_gen: v7x
topology: tpu7x:2x2x1
jax: 0.10.0
libtpu: 0.0.40
codegen_flags: <defaults>
</compile_context>

<pallas_src>
import functools

import jax
import jax.numpy as jnp
from jax.experimental import pallas as pl
from jax.experimental.pallas import tpu as pltpu


def attention_kernel(feats_ref, q_ref, mask_ref, padb_ref, wa_ref, wl_ref,
                     bl_ref, out_ref, *, bt):
    # feats_ref: (Bt, F, Np)   q_ref: (Bt, A, 1)   mask_ref: (Bt, 1, Np)
    # padb_ref : (1, Np)       wa_ref: (A, F)      wl_ref:  (A, 1)
    # bl_ref   : (1, 1) f32 scalar in SMEM         out_ref: (Bt, 1, Np)
    wa = wa_ref[...]           # (A, F), resident weights
    wl = wl_ref[...]           # (A, 1) f32
    pad_bias = padb_ref[...]   # (1, Np) f32: 0 for valid chunks, -inf for lane padding
    bl = bl_ref[0, 0]          # scalar output bias (SMEM)

    def one_row(b):
        # (A, F) @ (F, Np) -> (A, Np): lane-dense, full MXU output width, f32 accumulate.
        pf = jnp.dot(wa, feats_ref[b], preferred_element_type=jnp.float32)
        joint = jnp.tanh(pf + q_ref[b])                     # (A, Np); q broadcast over lanes
        # Score contraction over A: VPU multiply + sublane reduce -> lane-dense (1, Np).
        s = jnp.sum(joint * wl, axis=0, keepdims=True)
        scores = s + bl
        mask_b = mask_ref[b]                                # (1, Np)
        masked = scores * mask_b + pad_bias                 # padded cols -> -inf
        m = jnp.max(masked, axis=-1, keepdims=True)
        e = jnp.exp(masked - m)                             # padded cols -> exp(-inf) = 0
        em = e * mask_b
        denom_all = jnp.sum(e, axis=-1, keepdims=True)      # softmax denominator
        # out = (em/denom_all) / (sum(em)/denom_all + 1e-13) == em / (sum(em) + 1e-13*denom_all)
        denom = jnp.sum(em, axis=-1, keepdims=True) + 1e-13 * denom_all
        out_ref[b] = em * (1.0 / denom)

    if bt <= 8:
        for b in range(bt):      # short static loop -> fully unrolled, LLO-visible
            one_row(b)
    else:
        def body(b, carry):
            one_row(b)
            return carry
        jax.lax.fori_loop(0, bt, body, 0)


def attention_forward(hidden_state, audio_features, audio_feature_mask, params,
                      feats_dtype=None):
    B, N, F = audio_features.shape
    H = hidden_state.shape[-1]
    A = params['wa'].shape[-1]

    LANES = 128
    Np = ((N + LANES - 1) // LANES) * LANES

    feat_dt = jnp.dtype(feats_dtype) if feats_dtype is not None else audio_features.dtype
    feat_bytes = jnp.dtype(feat_dt).itemsize

    # ---- block-size selection (per-generation VMEM budget; keep grid >= 2 steps for megacore) ----
    try:
        vmem_cap = int(pltpu.get_tpu_info().vmem_capacity_bytes)
    except Exception:
        vmem_cap = 64 * 1024 * 1024          # conservative (v7x per-TC VMEM)
    budget = vmem_cap // 3                    # target for double-buffered streaming blocks
    # Per batch-row VMEM (incl. layout padding): feats tile + mask/out rows + query column.
    per_row = F * Np * feat_bytes + 2 * 8 * Np * 4 + A * 128 * 4
    bt_cap = max(1, budget // (2 * per_row))
    target_steps = 4 if B >= 4 else (2 if B >= 2 else 1)
    bt = int(max(1, min(bt_cap, max(1, B // target_steps), B)))
    Bpad = ((B + bt - 1) // bt) * bt
    n_steps = Bpad // bt
    vmem_limit = int(min(vmem_cap * 3 // 4,
                         max(32 * 1024 * 1024, 2 * bt * per_row + 4 * 1024 * 1024)))

    # ---- operand preparation (layout plumbing; in a full model the producer would emit
    #      the (B, F, N) layout directly) ----
    feats_t = jnp.swapaxes(audio_features, 1, 2).astype(feat_dt)            # (B, F, N)
    feats_t = jnp.pad(feats_t, ((0, Bpad - B), (0, 0), (0, Np - N)))        # (Bpad, F, Np)
    mask = jnp.pad(audio_feature_mask.astype(jnp.float32),
                   ((0, Bpad - B), (0, Np - N))).reshape(Bpad, 1, Np)
    # Query projection with fused (ba + bq) bias, once over the whole batch (f32).
    q = (hidden_state.astype(jnp.float32) @ params['wq'].astype(jnp.float32)
         + params['ba'].astype(jnp.float32) + params['bq'].astype(jnp.float32))  # (B, A)
    q = jnp.pad(q, ((0, Bpad - B), (0, 0))).reshape(Bpad, A, 1)
    # Pad-exclusion as an additive bias row: 0 for col < N, -inf for padded lanes.
    pad_bias = jnp.where(jnp.arange(Np) < N, 0.0, -jnp.inf).astype(jnp.float32).reshape(1, Np)
    wa_t = jnp.swapaxes(params['wa'], 0, 1).astype(feat_dt)                 # (A, F)
    wl = params['wl'].reshape(A, 1).astype(jnp.float32)
    bl = params['bl'].reshape(1, 1).astype(jnp.float32)

    kernel = functools.partial(attention_kernel, bt=bt)

    out = pl.pallas_call(
        kernel,
        out_shape=jax.ShapeDtypeStruct((Bpad, 1, Np), jnp.float32),
        grid=(n_steps,),
        in_specs=[
            pl.BlockSpec((bt, F, Np), lambda i: (i, 0, 0)),      # feats (transposed, lane-dense)
            pl.BlockSpec((bt, A, 1), lambda i: (i, 0, 0)),       # precomputed query column
            pl.BlockSpec((bt, 1, Np), lambda i: (i, 0, 0)),      # chunk validity mask
            pl.BlockSpec((1, Np), lambda i: (0, 0)),             # pad-exclusion bias (resident)
            pl.BlockSpec((A, F), lambda i: (0, 0)),              # wa^T (resident)
            pl.BlockSpec((A, 1), lambda i: (0, 0)),              # wl column (resident)
            pl.BlockSpec(memory_space=pltpu.MemorySpace.SMEM),   # scalar bl
        ],
        out_specs=pl.BlockSpec((bt, 1, Np), lambda i: (i, 0, 0)),
        compiler_params=pltpu.CompilerParams(
            dimension_semantics=("parallel",),
            vmem_limit_bytes=vmem_limit),
    )(feats_t, q, mask, pad_bias, wa_t, wl, bl)

    return out.reshape(Bpad, Np)[:B, :N]


def reference_forward(hidden_state, audio_features, mask, params):
    pf = jnp.einsum('bnf,fa->bna', audio_features, params['wa']) + params['ba']
    pq = hidden_state @ params['wq'] + params['bq']
    s = jnp.squeeze(jnp.tanh(pf + pq[:, None, :]) @ params['wl'], -1) + params['bl'][0, 0]
    masked = s * mask
    p = jax.nn.softmax(masked, axis=-1) * mask
    return p / (jnp.sum(p, axis=-1, keepdims=True) + 1e-13)


if __name__ == "__main__":
    # small, forward-consistent shapes
    B, N = 2, 8                 # batch, num_chunks
    F, H, A = 32, 32, 32        # audio_feature_dim, hidden_dim_encoder, attention_dim

    key = jax.random.PRNGKey(0)
    k = jax.random.split(key, 10)

    params = {
        'wa': jax.random.normal(k[0], (F, A), jnp.float32) * 0.1,   # audio_projection.weight^T
        'ba': jax.random.normal(k[1], (1, A), jnp.float32) * 0.1,   # audio_projection.bias
        'wq': jax.random.normal(k[2], (H, A), jnp.float32) * 0.1,   # query_projection.weight^T
        'bq': jax.random.normal(k[3], (1, A), jnp.float32) * 0.1,   # query_projection.bias
        'wl': jax.random.normal(k[4], (A, 1), jnp.float32) * 0.1,   # linear.weight^T
        'bl': jax.random.normal(k[5], (1, 1), jnp.float32) * 0.1,   # linear.bias
    }

    hidden_state = jax.random.normal(k[6], (B, H), jnp.float32)
    audio_features = jax.random.normal(k[7], (B, N, F), jnp.float32)
    # binary validity mask over chunks (1 = valid); last two chunks of batch 1 masked out
    audio_feature_mask = jnp.ones((B, N), jnp.float32).at[1, -2:].set(0.0)

    ref = reference_forward(hidden_state, audio_features, audio_feature_mask, params)

    # Exact (f32 feats) path.
    out = attention_forward(hidden_state, audio_features, audio_feature_mask, params)
    out = jax.block_until_ready(out)
    assert out.shape == (B, N)
    assert jnp.allclose(out, ref, atol=1e-5, rtol=1e-5)
    assert jnp.allclose(jnp.sum(out, axis=-1), jnp.ones((B,)), atol=1e-4)

    # bf16 feats/wa path (halves the dominant HBM stream); looser tolerance for the precision trade.
    out_bf16 = attention_forward(hidden_state, audio_features, audio_feature_mask, params,
                                 feats_dtype=jnp.bfloat16)
    out_bf16 = jax.block_until_ready(out_bf16)
    assert jnp.allclose(out_bf16, ref, atol=3e-2, rtol=3e-2)

    print("KERNEL_OK")
</pallas_src>

<mosaic_0001>
module attributes {stable_mosaic.version = 11 : i64} {
  func.func @attention_kernel(%arg0: i32, %arg1: memref<1x32x128xf32, #tpu.memory_space<vmem>>, %arg2: memref<1x32x1xf32, #tpu.memory_space<vmem>>, %arg3: memref<1x1x128xf32, #tpu.memory_space<vmem>>, %arg4: memref<1x128xf32, #tpu.memory_space<vmem>>, %arg5: memref<32x32xf32, #tpu.memory_space<vmem>>, %arg6: memref<32x1xf32, #tpu.memory_space<vmem>>, %arg7: memref<1x1xf32, #tpu.memory_space<smem>>, %arg8: memref<1x1x128xf32, #tpu.memory_space<vmem>>) attributes {dimension_semantics = [#tpu.dimension_semantics<parallel>], iteration_bounds = array<i64: 2>, scalar_prefetch = 0 : i64, scratch_operands = 0 : i64, tpu.core_type = #tpu.core_type<tc>, window_params = [{transform_indices = @transform_0, window_bounds = array<i64: 1, 32, 128>}, {transform_indices = @transform_1, window_bounds = array<i64: 1, 32, 1>}, {transform_indices = @transform_2, window_bounds = array<i64: 1, 1, 128>}, {pipeline_mode = #tpu.pipeline_mode<synchronous>, transform_indices = @transform_3, window_bounds = array<i64: 1, 128>}, {pipeline_mode = #tpu.pipeline_mode<synchronous>, transform_indices = @transform_4, window_bounds = array<i64: 32, 32>}, {pipeline_mode = #tpu.pipeline_mode<synchronous>, transform_indices = @transform_5, window_bounds = array<i64: 32, 1>}, {transform_indices = @transform_6, window_bounds = array<i64: 1, 1>}, {transform_indices = @transform_7, window_bounds = array<i64: 1, 1, 128>}]} {
    %c0 = arith.constant 0 : index
    %c0_0 = arith.constant 0 : index
    %0 = vector.load %arg5[%c0, %c0_0] : memref<32x32xf32, #tpu.memory_space<vmem>>, vector<32x32xf32>
    %c0_1 = arith.constant 0 : index
    %c0_2 = arith.constant 0 : index
    %1 = vector.load %arg6[%c0_1, %c0_2] : memref<32x1xf32, #tpu.memory_space<vmem>>, vector<32x1xf32>
    %c0_3 = arith.constant 0 : index
    %c0_4 = arith.constant 0 : index
    %2 = vector.load %arg4[%c0_3, %c0_4] : memref<1x128xf32, #tpu.memory_space<vmem>>, vector<1x128xf32>
    %c0_5 = arith.constant 0 : index
    %c0_6 = arith.constant 0 : index
    %3 = memref.load %arg7[%c0_5, %c0_6] : memref<1x1xf32, #tpu.memory_space<smem>>
    %c0_7 = arith.constant 0 : index
    %c0_8 = arith.constant 0 : index
    %c0_9 = arith.constant 0 : index
    %4 = vector.load %arg1[%c0_7, %c0_8, %c0_9] : memref<1x32x128xf32, #tpu.memory_space<vmem>>, vector<1x32x128xf32>
    %5 = vector.shape_cast %4 : vector<1x32x128xf32> to vector<32x128xf32>
    %cst = arith.constant dense<0.000000e+00> : vector<32x128xf32>
    %6 = tpu.matmul %0, %5, %cst {dimension_numbers = #tpu.dot_dimension_numbers<[1], [0], [0], [1], [0, 0, 1, 1], [], []>} : vector<32x32xf32>, vector<32x128xf32>, vector<32x128xf32> -> vector<32x128xf32>
    %c0_10 = arith.constant 0 : index
    %c0_11 = arith.constant 0 : index
    %c0_12 = arith.constant 0 : index
    %7 = vector.load %arg2[%c0_10, %c0_11, %c0_12] : memref<1x32x1xf32, #tpu.memory_space<vmem>>, vector<1x32x1xf32>
    %8 = vector.shape_cast %7 : vector<1x32x1xf32> to vector<32x1xf32>
    %9 = vector.broadcast %8 : vector<32x1xf32> to vector<32x128xf32>
    %10 = arith.addf %6, %9 : vector<32x128xf32>
    %11 = math.tanh %10 : vector<32x128xf32>
    %12 = vector.broadcast %1 : vector<32x1xf32> to vector<32x128xf32>
    %13 = arith.mulf %11, %12 : vector<32x128xf32>
    %cst_13 = arith.constant dense<0.000000e+00> : vector<128xf32>
    %14 = vector.multi_reduction <add>, %13, %cst_13 [0] : vector<32x128xf32> to vector<128xf32>
    %15 = vector.shape_cast %14 : vector<128xf32> to vector<1x128xf32>
    %16 = vector.broadcast %3 : f32 to vector<1x128xf32>
    %17 = arith.addf %15, %16 : vector<1x128xf32>
    %c0_14 = arith.constant 0 : index
    %c0_15 = arith.constant 0 : index
    %c0_16 = arith.constant 0 : index
    %18 = vector.load %arg3[%c0_14, %c0_15, %c0_16] : memref<1x1x128xf32, #tpu.memory_space<vmem>>, vector<1x1x128xf32>
    %19 = vector.shape_cast %18 : vector<1x1x128xf32> to vector<1x128xf32>
    %20 = arith.mulf %17, %19 : vector<1x128xf32>
    %21 = arith.addf %20, %2 : vector<1x128xf32>
    %cst_17 = arith.constant dense<0xFF800000> : vector<1xf32>
    %22 = vector.multi_reduction <maximumf>, %21, %cst_17 [1] : vector<1x128xf32> to vector<1xf32>
    %23 = vector.shape_cast %22 : vector<1xf32> to vector<1x1xf32>
    %24 = vector.broadcast %23 : vector<1x1xf32> to vector<1x128xf32>
    %25 = arith.subf %21, %24 : vector<1x128xf32>
    %26 = math.exp %25 : vector<1x128xf32>
    %27 = arith.mulf %26, %19 : vector<1x128xf32>
    %cst_18 = arith.constant dense<0.000000e+00> : vector<1xf32>
    %28 = vector.multi_reduction <add>, %26, %cst_18 [1] : vector<1x128xf32> to vector<1xf32>
    %29 = vector.shape_cast %28 : vector<1xf32> to vector<1x1xf32>
    %cst_19 = arith.constant dense<0.000000e+00> : vector<1xf32>
    %30 = vector.multi_reduction <add>, %27, %cst_19 [1] : vector<1x128xf32> to vector<1xf32>
    %31 = vector.shape_cast %30 : vector<1xf32> to vector<1x1xf32>
    %cst_20 = arith.constant 9.99999982E-14 : f32
    %32 = vector.broadcast %cst_20 : f32 to vector<1x1xf32>
    %33 = arith.mulf %32, %29 : vector<1x1xf32>
    %34 = arith.addf %31, %33 : vector<1x1xf32>
    %cst_21 = arith.constant 1.000000e+00 : f32
    %35 = vector.broadcast %cst_21 : f32 to vector<1x1xf32>
    %36 = arith.divf %35, %34 : vector<1x1xf32>
    %37 = vector.broadcast %36 : vector<1x1xf32> to vector<1x128xf32>
    %38 = arith.mulf %27, %37 : vector<1x128xf32>
    %c0_22 = arith.constant 0 : index
    %c0_23 = arith.constant 0 : index
    %c0_24 = arith.constant 0 : index
    %39 = vector.load %arg8[%c0_22, %c0_23, %c0_24] : memref<1x1x128xf32, #tpu.memory_space<vmem>>, vector<1x1x128xf32>
    %40 = vector.shape_cast %39 : vector<1x1x128xf32> to vector<1x128xf32>
    %41 = vector.shape_cast %38 : vector<1x128xf32> to vector<1x1x128xf32>
    tpu.vector_store %arg8[%c0_22, %c0_23, %c0_24], %41 {strides = array<i32>} : memref<1x1x128xf32, #tpu.memory_space<vmem>>, vector<1x1x128xf32>,
    return
  }
  func.func @transform_0(%arg0: i32) -> (i32, i32, i32) {
    %c0_i32 = arith.constant 0 : i32
    %c0_i32_0 = arith.constant 0 : i32
    %c0_i32_1 = arith.constant 0 : i32
    return %arg0, %c0_i32, %c0_i32_0 : i32, i32, i32
  }
  func.func @transform_1(%arg0: i32) -> (i32, i32, i32) {
    %c0_i32 = arith.constant 0 : i32
    %c0_i32_0 = arith.constant 0 : i32
    %c0_i32_1 = arith.constant 0 : i32
    return %arg0, %c0_i32, %c0_i32_0 : i32, i32, i32
  }
  func.func @transform_2(%arg0: i32) -> (i32, i32, i32) {
    %c0_i32 = arith.constant 0 : i32
    %c0_i32_0 = arith.constant 0 : i32
    %c0_i32_1 = arith.constant 0 : i32
    return %arg0, %c0_i32, %c0_i32_0 : i32, i32, i32
  }
  func.func @transform_3(%arg0: i32) -> (i32, i32) {
    %c0_i32 = arith.constant 0 : i32
    %c0_i32_0 = arith.constant 0 : i32
    %c0_i32_1 = arith.constant 0 : i32
    return %c0_i32, %c0_i32_0 : i32, i32
  }
  func.func @transform_4(%arg0: i32) -> (i32, i32) {
    %c0_i32 = arith.constant 0 : i32
    %c0_i32_0 = arith.constant 0 : i32
    %c0_i32_1 = arith.constant 0 : i32
    return %c0_i32, %c0_i32_0 : i32, i32
  }
  func.func @transform_5(%arg0: i32) -> (i32, i32) {
    %c0_i32 = arith.constant 0 : i32
    %c0_i32_0 = arith.constant 0 : i32
    %c0_i32_1 = arith.constant 0 : i32
    return %c0_i32, %c0_i32_0 : i32, i32
  }
  func.func @transform_6(%arg0: i32) -> (i32, i32) {
    %c0_i32 = arith.constant 0 : i32
    %c0_i32_0 = arith.constant 0 : i32
    %c0_i32_1 = arith.constant 0 : i32
    return %c0_i32, %c0_i32_0 : i32, i32
  }
  func.func @transform_7(%arg0: i32) -> (i32, i32, i32) {
    %c0_i32 = arith.constant 0 : i32
    %c0_i32_0 = arith.constant 0 : i32
    %c0_i32_1 = arith.constant 0 : i32
    return %arg0, %c0_i32, %c0_i32_0 : i32, i32, i32
  }
}

</mosaic_0001>

<bundles_post_ra>
// kernel: tpu_custom_call.1
= control target key start
LH: loop header
LB: loop body
LE: loop exit
PB: predicated region body
PF: predicated region fallthrough
CT: control target
= control target key end

     0   :  { %s953_s0 = inlined_call_operand.vmem [shape: f32[2,32,128], index: 0, kind: input, shape index: {}]   ;;  %s954_s1 = inlined_call_operand.vmem [shape: f32[2,32,1], index: 1, kind: input, shape index: {}]   ;;  %s955_s2 = inlined_call_operand.vmem [shape: f32[2,1,128], index: 2, kind: input, shape index: {}]   ;;  %s956_s3 = inlined_call_operand.vmem [shape: f32[1,128], index: 3, kind: input, shape index: {}]   ;;  %s957_s4 = inlined_call_operand.vmem [shape: f32[32,32], index: 4, kind: input, shape index: {}]   ;;  %s958_s5 = inlined_call_operand.vmem [shape: f32[32,1], index: 5, kind: input, shape index: {}]   ;;  %s959_s6 = inlined_call_operand.<no memory space> [shape: f32[1,1], index: 6, kind: input, shape index: {}]   ;;  %s960_s7 = inlined_call_operand.hbm [shape: f32[2,1,128], index: 7, kind: output, shape index: {}]  }
   0x1   :  { %12 = sst [smem:[#allocation2]] %s959_s6 }
   0x2   :  { %13 = vsyncpa [#allocation4], 0 }
   0x3   :  { %15 = vsyncpa [#allocation4 + $0x1], 0  ;;  %s812_s26 = smov 0   ;;  %s814_s27 = smov 0  }
   0x4   :  { %s816_s28 = smov 0   ;;  %s818_s29 = smov 0  }
   0x5 LB: > { %s833_s6 = sadd.s32 4294967295, %s765_s29   ;;  %s598_s30 = sadd.s32 4294967294, %s765_s29   ;;  %s765_s29 = sphi %s818_s29, %s966_s29   ;;  %s761_s28 = sphi %s816_s28, %s965_s28   ;;  %s757_s27 = sphi %s814_s27, %s964_s27   ;;  %s753_s26 = sphi %s812_s26, %s963_s26  }
   0x6   : > { %s837_s8 = sadd.s32 1, %s765_s29   ;;  %s190_s9 = sadd.s32 1, %s761_s28 }
   0x7   : > { %s187_s10 = ssub.s32 %s765_s29, %s837_s8  ;;  %p200_p0 = scmp.ne.s32.totalorder %s761_s28, %s757_s27 }
   0x8   : > { %p188_p1 = scmp.eq.s32.totalorder %s187_s10, 0  ;;  %p201_p2 = scmp.eq.s32.totalorder %s833_s6, 1 }
   0x9   : > { %p206_p3 = scmp.ne.s32.totalorder %s757_s27, %s753_s26  ;;  %p207_p4 = scmp.eq.s32.totalorder %s598_s30, 1 }
   0xa   : > { %s848_s11 = scalar_select %p188_p1, %s761_s28, %s190_s9  }
   0xb   : > { %p850_p5 = por %p201_p2, %p200_p0  ;;  %p854_p6 = por %p207_p4, %p206_p3 }
   0xc   : > { %p601_p7 = scmp.ge.s32.totalorder %s765_s29, 1  ;;  %p259_p8 = scmp.lt.s32.totalorder %s765_s29, 3 }
   0xe   : > { %p260_p9 = pnand %p601_p7, %p259_p8 }
   0xf   : > { %p298_p10 = scmp.lt.s32.totalorder (!%p260_p9), %s833_s6, 1  ;;  %v311_v0 = vld [vmem:[%s957_s4] sm:$0xff] (!%p260_p9)  ;;  %vm349_vm0 = vcmask (!%p260_p9), 261120   ;;  %v313_v1 = vld [vmem:[%s957_s4 + $0x10] sm:$0xff] (!%p260_p9)  ;;  %v767_v2 = vmov (!%p260_p9), 0   ;;  %v316_v14 = vld [vmem:[%s958_s5 + $0x8] sm:$0xff] (!%p260_p9) }
  0x10   : > { %263 = sbr.rel (%p260_p9) target bundleno = 622 (0x26e), region = 48  ;;  %631 = vmatprep.mubr.msk.f32.mxu0 (!%p260_p9), %vm349_vm0, %v311_v0  ;;  %634 = vmatprep.mubr.msk.f32.mxu1 (!%p260_p9), %vm349_vm0, %v313_v1  ;;  %v315_v13 = vld [vmem:[%s958_s5] sm:$0xff] (!%p260_p9)  ;;  %v312_v15 = vld [vmem:[%s957_s4 + $0x8] sm:$0xff] (!%p260_p9)  ;;  %v314_v16 = vld [vmem:[%s957_s4 + $0x18] sm:$0xff] (!%p260_p9)  ;;  %s320_s24 = sld [smem:[#allocation2]] (!%p260_p9)  ;;  %vm489_vm1 = vcmask (!%p260_p9), 1040384  }
  0x11   : > { %689 = vset.pattern.permute.xlu0 (!%p260_p9), %v767_v2  ;;  %690 = vset.pattern.permute.xlu1 (!%p260_p9), %v767_v2  ;;  %v317_v17 = vld [vmem:[%s958_s5 + $0x10] sm:$0xff] (!%p260_p9)  ;;  %v318_v18 = vld [vmem:[%s958_s5 + $0x18] sm:$0xff] (!%p260_p9)  ;;  %v319_v55 = vld [vmem:[%s956_s3] sm:$0x1] (!%p260_p9)  ;;  %s610_s15 = sshll.u32 (!%p260_p9), %s833_s6, 4 }
  0x12   : > { %s911_s21 = scalar_lea.hbm (!%p260_p9), %s960_s7, %s610_s15 }
  0x16   : > { %v484_v51 = vstv (!%p260_p9), %s320_s24 }
  0x17   : > { %s870_s18 = scalar_select %p298_p10, %s833_s6, 1 }
  0x18   : > { %s768_s6 = smov [#allocation3]  }
  0x19   : > { %s613_s19 = sshll.u32 %s870_s18, 5  ;;  %s310_s9 = scalar_lea.vmem %s955_s2, %s870_s18 }
  0x1a   : > { %s302_s22 = scalar_lea.vmem %s953_s0, %s613_s19  ;;  %s307_s25 = scalar_lea.vmem %s954_s1, %s613_s19  ;;  %v486_v53 = vld [vmem:[%s310_s9] sm:$0x1] }
  0x1b   : > { %v321_v3 = vld [vmem:[%s302_s22] sm:$0xff]  ;;  %v322_v4 = vld [vmem:[%s302_s22 + $0x8] sm:$0xff]  ;;  %v323_v5 = vld [vmem:[%s302_s22 + $0x10] sm:$0xff]  ;;  %s296_s18 = sand.u32 1, %s757_s27   ;;  %s707_s24 = sshll.u32 %s768_s6, 4  ;;  %s708_s24 = int_to_ptr.vmem [resolvable:$false] %s707_s24 }
  0x1c   : > { %v637_v6 = vpack.c.bf16 %v322_v4, %v321_v3  ;;  %v324_v7 = vld [vmem:[%s302_s22 + $0x18] sm:$0xff]  ;;  %v325_v8 = vld [vmem:[%s307_s25] sm:$0xff]  ;;  %v327_v9 = vld [vmem:[%s307_s25 + $0x10] sm:$0xff]  ;;  %s297_s16 = scalar_lea.vmem [#allocation3], %s296_s18  ;;  %s510_s22 = scalar_lea.sflag [#allocation4], %s296_s18 }
  0x1d   : > { %v641_v10 = vpack.c.bf16 %v324_v7, %v323_v5  ;;  %331 = vperm.xlu0 %689, %v325_v8   ;;  %341 = vperm.xlu1 %690, %v327_v9   ;;  %v326_v11 = vld [vmem:[%s307_s25 + $0x8] sm:$0xff]  ;;  %v328_v12 = vld [vmem:[%s307_s25 + $0x18] sm:$0xff]  ;;  %s522_s17 = sshll.u32 %s297_s16, 4  ;;  %s709_s25 = scalar_lea.vmem %s708_s24, 32  ;;  %s913_s17 = int_to_ptr.vmem [resolvable:$true] %s522_s17 }
  0x1e   : > { %638 = vmatprep.subr.bf16.mxu0 %v637_v6  ;;  %645 = vmatprep.subr.bf16.mxu1 %v637_v6  ;;  %s703_s23 = scalar_lea.vmem %s913_s17, 16  ;;  %p710_p0 = scmp.lt.s32.totalorder %s913_s17, %s708_s24 }
  0x1f   : > { %640 = vmatpush3.bf16.msra.mxu0 %v637_v6  ;;  %647 = vmatpush3.bf16.msra.mxu1 %v637_v6  ;;  %p704_p11 = scmp.ne.s32.totalorder %s913_s17, %s703_s23  ;;  %p711_p1 = scmp.lt.s32.totalorder %s709_s25, %s703_s23 }
  0x20   : > { %642 = vmatprep.subr.bf16.mxu0 %v641_v10  ;;  %646 = vmatprep.subr.bf16.mxu1 %v641_v10 }
  0x21   : > { %336 = vperm.xlu0 %689, %v326_v11   ;;  %346 = vperm.xlu1 %690, %v328_v12   ;;  %p705_p12 = pnand %p704_p11, %p850_p5  ;;  %p712_p2 = por %p711_p1, %p710_p0 }
  0x23   : > { %644 = vmatpush3.bf16.msra.mxu0 %v641_v10  ;;  %648 = vmatpush3.bf16.msra.mxu1 %v641_v10  ;;  %p706_p13 = pneg %p705_p12 }
  0x25   : > { %453 = vperm.xlu0 %689, %v315_v13   ;;  %458 = vperm.xlu1 %690, %v316_v14   ;;  %p713_p3 = pnand %p712_p2, %p706_p13 }
  0x26   : > { %632 = vmatmul.mubr.msk.f32.vlgmr.msra.gmra.mrb[0].mxu0 %vm349_vm0, %v312_v15  ;;  %635 = vmatmul.mubr.msk.f32.vlgmr.msra.gmra.mrb[0].mxu1 %vm349_vm0, %v314_v16 }
  0x29   : > { %463 = vperm.xlu0 %689, %v317_v17   ;;  %468 = vperm.xlu1 %690, %v318_v18  }
  0x9c   : > { %v332_v19 = vpop.permute.xlu0 %331  ;;  %v342_v20 = vpop.permute.xlu1 %341 }
  0xa0   : > { %v337_v21 = vpop.permute.xlu0 %336  ;;  %v347_v27 = vpop.permute.xlu1 %346 }
  0xa4   : > { %v454_v31 = vpop.permute.xlu0 %453  ;;  %v459_v33 = vpop.permute.xlu1 %458 }
  0xa8   : > { %v464_v39 = vpop.permute.xlu0 %463  ;;  %v469_v42 = vpop.permute.xlu1 %468 }
  0xf9   : > { %v633_v22 = vpop.f32.mrb[0].mxu0  ;;  %v636_v23 = vpop.f32.mrb[0].mxu1 }
  0xfa   : > { %v434_v24 = vadd.f32 %v633_v22, %v337_v21  ;;  %v428_v25 = vpop.f32.mrb[1].mxu0  ;;  %v438_v26 = vpop.f32.mrb[1].mxu1  ;;  %v444_v30 = vadd.f32 %v636_v23, %v347_v27 }
  0xfb   : > { %v429_v28 = vadd.f32 %v428_v25, %v332_v19  ;;  %v439_v29 = vadd.f32 %v438_v26, %v342_v20 }
  0xfc   : > { %691 = vtanh.f32 %v434_v24 }
  0xfd   : > { %693 = vtanh.f32 %v429_v28 }
  0xfe   : > { %695 = vtanh.f32 %v439_v29 }
  0xff   : > { %697 = vtanh.f32 %v444_v30 }
 0x106   : > { %v692_v32 = vpop.eup %691 }
 0x107   : > { %v472_v34 = vmul.f32 %v692_v32, %v459_v33  ;;  %v694_v35 = vpop.eup %693 }
 0x108   : > { %v696_v36 = vpop.eup %695  ;;  %v471_v37 = vmul.f32 %v694_v35, %v454_v31 }
 0x109   : > { %v698_v38 = vpop.eup %697  ;;  %v473_v41 = vmul.f32 %v696_v36, %v464_v39 }
 0x10a   : > { %v475_v40 = vadd.f32 %v472_v34, %v471_v37  ;;  %v474_v43 = vmul.f32 %v698_v38, %v469_v42 }
 0x10c   : > { %v476_v44 = vadd.f32 %v475_v40, %v473_v41 }
 0x10e   : > { %v477_v45 = vadd.f32 %v476_v44, %v474_v43 }
 0x110   : > { %v478_v46 = vrot.slane %v477_v45, 4 }
 0x112   : > { %v479_v47 = vadd.f32 %v478_v46, %v477_v45 }
 0x114   : > { %v480_v48 = vrot.slane %v479_v47, 2 }
 0x116   : > { %v481_v49 = vadd.f32 %v480_v48, %v479_v47 }
 0x118   : > { %v482_v50 = vrot.slane %v481_v49, 1 }
 0x11a   : > { %v483_v52 = vadd.f32 %v482_v50, %v481_v49 }
 0x11c   : > { %v485_v54 = vadd.f32 %v484_v51, %v483_v52 }
 0x11e   : > { %v487_v56 = vmul.f32 %v486_v53, %v485_v54 }
 0x120   : > { %v488_v57 = vadd.f32 %v487_v56, %v319_v55 }
 0x122   : > { %v490_v58 = vsel %vm489_vm1, %v488_v57, -inf }
 0x123   : > { %491 = vmax.xlane.f32.xlu0 %v490_v58 }
 0x1b0   : > { %v492_v59 = vpop.xlane.xlu0 %491 }
 0x1b1   : > { %v493_v60 = vsub.f32 %v488_v57, %v492_v59 }
 0x1b3   : > { %v494_v61 = vmul.f32 1.442695, %v493_v60 }
 0x1b5   : > { %699 = vpow2.f32 %v494_v61 }
 0x1bf   : > { %v700_v62 = vpop.eup %699 }
 0x1c0   : > { %v497_v63 = vsel %vm489_vm1, %v700_v62, 0.0  ;;  %v496_v0 = vmul.f32 %v700_v62, %v486_v53 }
 0x1c1   : > { %498 = vadd.xlane.f32.xlu1 %v497_v63 }
 0x1c2   : > { %v500_v1 = vsel %vm489_vm1, %v496_v0, 0.0 }
 0x1c3   : > { %501 = vadd.xlane.f32.xlu0 %v500_v1 }
 0x24e   : > { %v499_v2 = vpop.xlane.xlu1 %498 }
 0x24f   : > { %v503_v3 = vmul.f32 1e-13, %v499_v2 }
 0x250   : > { %v502_v4 = vpop.xlane.xlu0 %501 }
 0x251   : > { %v504_v5 = vadd.f32 %v503_v3, %v502_v4 }
 0x253   : > { %701 = vrcp.f32 %v504_v5 }
 0x25d   : > { %v702_v6 = vpop.eup %701 }
 0x25e   : > { %v507_v7 = vmul.f32 %v702_v6, %v496_v0 }
 0x260   : > { %508 = vst [vmem:[%s297_s16] sm:$0x1] %v507_v7 }
 0x261   : > { %716 = shalt.err (!%p713_p3)
}
 0x262   : > { %s717_s30 = scalar_lea.hbm %s911_s21, 16  ;;  %s721_s14 = scalar_lea.hbm %s960_s7, 32 }
 0x263   : > { %p718_p4 = scmp.ne.s32.totalorder %s911_s21, %s717_s30  ;;  %p722_p9 = scmp.lt.u32.totalorder %s911_s21, %s960_s7 }
 0x264   : > { %p723_p10 = scmp.lt.u32.totalorder %s721_s14, %s717_s30  ;;  %p725_p12 = scmp.lt.u32.totalorder %s717_s30, %s911_s21 }
 0x265   : > { %p719_p7 = pnand %p718_p4, %p850_p5 }
 0x266   : > { %p724_p11 = por %p723_p10, %p722_p9 }
 0x267   : > { %p720_p8 = pneg %p719_p7 }
 0x268   : > { %p726_p13 = por %p725_p12, %p724_p11 }
 0x26a   : > { %p727_p0 = pnand %p726_p13, %p720_p8 }
 0x26c   : > { %730 = shalt.err (!%p727_p0)
}
 0x26d   : > { %649 = dma.vmem_to_hbm [thread:$0]  (%p850_p5), %s913_s17, 16, %s911_s21, %s510_s22  }
 0x26e PF: > { %p655_p1 = scmp.ge.s32.totalorder %s765_s29, 2  ;;  %s534_s16 = sand.u32 1, %s753_s26  }
 0x26f   : > { %s535_s19 = scalar_lea.sflag [#allocation4], %s534_s16 }
 0x270   : > { %p652_p2 = pnand %p655_p1, %p854_p6 }
 0x272   : > { %748 = dma.done.wait (!%p652_p2), %s535_s19, 16  }
 0x273   : > { %750 = vsyncadd (!%p652_p2), %s535_s19, 4294967280  ;;  %p18_p3 = scmp.ge.s32.totalorder %s837_s8, 4   ;;  %s963_s26 = smov %s757_s27 }
 0x274   : > { %s964_s27 = smov %s761_s28  ;;  %s965_s28 = smov %s848_s11 }
 0x275   : > { %s966_s29 = smov %s837_s8  ;;  %20 = sbr.rel (!%p18_p3) target bundleno = 5 (0x5), region = 89 }
 0x27c   :  { %539 = vsyncpa [#allocation4], 1 }
 0x27d   :  { %541 = vsyncpa [#allocation4 + $0x1], 1 }

</bundles_post_ra>
